<compile_context>
chip_gen: v5e
topology: v5e:2x2
jax: 0.10.0
libtpu: 0.0.40
codegen_flags: <defaults>
</compile_context>

<pallas_src>
import functools
from math import sqrt

import jax
import jax.numpy as jnp
from jax.experimental import pallas as pl
from jax.experimental.pallas import tpu as pltpu


# ---------------------------------------------------------------------------
# Tiling helpers
# ---------------------------------------------------------------------------
def _pick_tile(dim, target, *, lane=False):
    """Largest tile <= target that divides dim (lane tiles: multiples of 128).
    Falls back to the full dim (always legal for BlockSpec)."""
    if dim <= target:
        return dim
    step = 128 if lane else 8
    t = (target // step) * step
    while t >= step:
        if dim % t == 0:
            return t
        t -= step
    return dim


def _largest_divisor(n, cap):
    best = 1
    for c in range(1, min(n, cap) + 1):
        if n % c == 0:
            best = c
    return best


# ---------------------------------------------------------------------------
# Tiled linear (y = x @ w + b) with k-reduction grid axis
# ---------------------------------------------------------------------------
def _linear_kernel(x_ref, w_ref, b_ref, o_ref, acc_ref):
    @pl.when(pl.program_id(2) == 0)
    def _():
        acc_ref[...] = jnp.zeros_like(acc_ref)

    acc_ref[...] += jnp.dot(
        x_ref[...], w_ref[...], preferred_element_type=jnp.float32
    )

    @pl.when(pl.program_id(2) == pl.num_programs(2) - 1)
    def _():
        o_ref[...] = (acc_ref[...] + b_ref[...]).astype(o_ref.dtype)


def linear(x2d, w, b):
    """y = x2d @ w + b as a tiled Pallas matmul."""
    M, K = x2d.shape
    N = w.shape[1]
    tm = _pick_tile(M, 256)
    tk = _pick_tile(K, 512, lane=True)
    tn = _pick_tile(N, 256, lane=True)
    return pl.pallas_call(
        _linear_kernel,
        out_shape=jax.ShapeDtypeStruct((M, N), jnp.float32),
        grid_spec=pltpu.PrefetchScalarGridSpec(
            num_scalar_prefetch=0,
            grid=(M // tm, N // tn, K // tk),
            in_specs=[
                pl.BlockSpec((tm, tk), lambda i, j, k: (i, k)),
                pl.BlockSpec((tk, tn), lambda i, j, k: (k, j)),
                pl.BlockSpec((1, tn), lambda i, j, k: (0, j)),
            ],
            out_specs=pl.BlockSpec((tm, tn), lambda i, j, k: (i, j)),
            scratch_shapes=[pltpu.VMEM((tm, tn), jnp.float32)],
        ),
        compiler_params=pltpu.CompilerParams(
            dimension_semantics=("parallel", "parallel", "arbitrary"),
            vmem_limit_bytes=48 * 1024 * 1024,
        ),
    )(x2d, w, b.reshape(1, N))


# ---------------------------------------------------------------------------
# Flash-style attention (no attention-weight materialization)
# ---------------------------------------------------------------------------
def _flash_attn_kernel(q_ref, k_ref, v_ref, o_ref, m_sc, l_sc, acc_sc, *, scale):
    si = pl.program_id(2)

    @pl.when(si == 0)
    def _():
        m_sc[...] = jnp.full_like(m_sc, -jnp.inf)
        l_sc[...] = jnp.zeros_like(l_sc)
        acc_sc[...] = jnp.zeros_like(acc_sc)

    # bf16 operands for the MXU, f32 accumulation; softmax math stays f32.
    q = q_ref[...].astype(jnp.bfloat16)
    k = k_ref[...].astype(jnp.bfloat16)
    s = jnp.einsum("gqe,gke->gqk", q, k,
                   preferred_element_type=jnp.float32) * scale  # (G, Lt, St)

    m_prev = m_sc[...]
    m_new = jnp.maximum(m_prev, s.max(axis=-1, keepdims=True))
    alpha = jnp.exp(m_prev - m_new)
    p = jnp.exp(s - m_new)
    l_sc[...] = alpha * l_sc[...] + p.sum(axis=-1, keepdims=True)
    acc_sc[...] = alpha * acc_sc[...] + jnp.einsum(
        "gqk,gkd->gqd",
        p.astype(jnp.bfloat16),
        v_ref[...].astype(jnp.bfloat16),
        preferred_element_type=jnp.float32,
    )
    m_sc[...] = m_new

    @pl.when(si == pl.num_programs(2) - 1)
    def _():
        o_ref[...] = (
            acc_sc[...] * pl.reciprocal(l_sc[...], approx=True)
        ).astype(o_ref.dtype)


def flash_attention(q, k, v, scale):
    """q: (BH, L, E), k: (BH, S, E), v: (BH, S, Dv) -> out (BH, L, Dv)."""
    BH, L, E = q.shape
    S = k.shape[1]
    Dv = v.shape[2]
    G = _largest_divisor(BH, 8)        # heads/batches per grid step
    Lt = _pick_tile(L, 128)            # query tile
    St = _pick_tile(S, 256)            # key/value tile (reduction axis)
    kernel = functools.partial(_flash_attn_kernel, scale=scale)
    return pl.pallas_call(
        kernel,
        out_shape=jax.ShapeDtypeStruct((BH, L, Dv), jnp.float32),
        grid_spec=pltpu.PrefetchScalarGridSpec(
            num_scalar_prefetch=0,
            grid=(BH // G, L // Lt, S // St),
            in_specs=[
                pl.BlockSpec((G, Lt, E), lambda g, li, si: (g, li, 0)),
                pl.BlockSpec((G, St, E), lambda g, li, si: (g, si, 0)),
                pl.BlockSpec((G, St, Dv), lambda g, li, si: (g, si, 0)),
            ],
            out_specs=pl.BlockSpec((G, Lt, Dv), lambda g, li, si: (g, li, 0)),
            scratch_shapes=[
                pltpu.VMEM((G, Lt, 1), jnp.float32),   # running max
                pltpu.VMEM((G, Lt, 1), jnp.float32),   # running denom
                pltpu.VMEM((G, Lt, Dv), jnp.float32),  # output accumulator
            ],
        ),
        compiler_params=pltpu.CompilerParams(
            dimension_semantics=("parallel", "parallel", "arbitrary"),
            vmem_limit_bytes=48 * 1024 * 1024,
        ),
    )(q, k, v)


# ---------------------------------------------------------------------------
# Attention variant that also returns the attention weights
# (only used when the caller requests output_attention=True)
# ---------------------------------------------------------------------------
def _attn_weights_kernel(q_ref, k_ref, v_ref, o_ref, a_ref, *, scale):
    q = q_ref[...].astype(jnp.bfloat16)
    k = k_ref[...].astype(jnp.bfloat16)
    s = jnp.einsum("gqe,gke->gqk", q, k,
                   preferred_element_type=jnp.float32) * scale
    m = s.max(axis=-1, keepdims=True)
    p = jnp.exp(s - m)
    p = p * pl.reciprocal(p.sum(axis=-1, keepdims=True), approx=True)
    a_ref[...] = p
    o_ref[...] = jnp.einsum(
        "gqk,gkd->gqd",
        p.astype(jnp.bfloat16),
        v_ref[...].astype(jnp.bfloat16),
        preferred_element_type=jnp.float32,
    ).astype(o_ref.dtype)


def attention_with_weights(q, k, v, scale):
    BH, L, E = q.shape
    S = k.shape[1]
    Dv = v.shape[2]
    G = _largest_divisor(BH, 8)
    Lt = _pick_tile(L, 128)
    kernel = functools.partial(_attn_weights_kernel, scale=scale)
    out, attn = pl.pallas_call(
        kernel,
        out_shape=(
            jax.ShapeDtypeStruct((BH, L, Dv), jnp.float32),
            jax.ShapeDtypeStruct((BH, L, S), jnp.float32),
        ),
        grid_spec=pltpu.PrefetchScalarGridSpec(
            num_scalar_prefetch=0,
            grid=(BH // G, L // Lt),
            in_specs=[
                pl.BlockSpec((G, Lt, E), lambda g, li: (g, li, 0)),
                pl.BlockSpec((G, S, E), lambda g, li: (g, 0, 0)),
                pl.BlockSpec((G, S, Dv), lambda g, li: (g, 0, 0)),
            ],
            out_specs=[
                pl.BlockSpec((G, Lt, Dv), lambda g, li: (g, li, 0)),
                pl.BlockSpec((G, Lt, S), lambda g, li: (g, li, 0)),
            ],
        ),
        compiler_params=pltpu.CompilerParams(
            dimension_semantics=("parallel", "parallel"),
            vmem_limit_bytes=48 * 1024 * 1024,
        ),
    )(q, k, v)
    return out, attn


# ---------------------------------------------------------------------------
# AttentionLayer forward
# ---------------------------------------------------------------------------
def init_params(key, d_model, n_heads, d_keys=None, d_values=None):
    d_keys = d_keys or d_model // n_heads
    d_values = d_values or d_model // n_heads
    ks = jax.random.split(key, 8)

    def lin(kw, kb, din, dout):
        # nn.Linear stores (out, in); we keep (in, out) for x @ W.
        bound = 1.0 / sqrt(din)
        w = jax.random.uniform(kw, (din, dout), jnp.float32, -bound, bound)
        b = jax.random.uniform(kb, (dout,), jnp.float32, -bound, bound)
        return w, b

    p = {}
    p["wq"], p["bq"] = lin(ks[0], ks[1], d_model, d_keys * n_heads)
    p["wk"], p["bk"] = lin(ks[2], ks[3], d_model, d_keys * n_heads)
    p["wv"], p["bv"] = lin(ks[4], ks[5], d_model, d_values * n_heads)
    p["wo"], p["bo"] = lin(ks[6], ks[7], d_values * n_heads, d_model)
    p["n_heads"] = n_heads
    p["d_keys"] = d_keys
    p["d_values"] = d_values
    return p


def attention_layer_forward(params, queries, keys, values, attn_mask=None,
                            output_attention=False):
    # TODO(synk): attn_mask handling (inner attention's masking policy is
    # module-dependent); full (unmasked) attention is implemented here.
    B, L, d_model = queries.shape
    _, S, _ = keys.shape
    H = params["n_heads"]
    E = params["d_keys"]
    Dv = params["d_values"]
    dq, dk = H * E, H * E

    if queries is keys and keys is values:
        # Self-attention: fuse the three projections into one matmul so the
        # activations are read from HBM only once.
        w_fused = jnp.concatenate([params["wq"], params["wk"], params["wv"]],
                                  axis=1)
        b_fused = jnp.concatenate([params["bq"], params["bk"], params["bv"]],
                                  axis=0)
        qkv = linear(queries.reshape(B * L, d_model), w_fused, b_fused)
        q2d = qkv[:, :dq]
        k2d = qkv[:, dq:dq + dk]
        v2d = qkv[:, dq + dk:]
    else:
        q2d = linear(queries.reshape(B * L, d_model), params["wq"], params["bq"])
        k2d = linear(keys.reshape(B * S, d_model), params["wk"], params["bk"])
        v2d = linear(values.reshape(B * S, d_model), params["wv"], params["bv"])

    # Head-major layout for the attention kernel (single XLA transpose each).
    q = q2d.reshape(B, L, H, E).transpose(0, 2, 1, 3).reshape(B * H, L, E)
    k = k2d.reshape(B, S, H, E).transpose(0, 2, 1, 3).reshape(B * H, S, E)
    v = v2d.reshape(B, S, H, Dv).transpose(0, 2, 1, 3).reshape(B * H, S, Dv)

    scale = 1.0 / sqrt(E)
    if output_attention:
        out_bh, attn = attention_with_weights(q, k, v, scale)
        attn = attn.reshape(B, H, L, S)
    else:
        out_bh = flash_attention(q, k, v, scale)
        attn = None

    out = out_bh.reshape(B, H, L, Dv).transpose(0, 2, 1, 3).reshape(B * L, H * Dv)
    out = linear(out, params["wo"], params["bo"]).reshape(B, L, d_model)
    return out, attn


# ---------------------------------------------------------------------------
if __name__ == "__main__":
    B, L, S = 2, 8, 8
    d_model, n_heads = 32, 4

    key = jax.random.PRNGKey(0)
    kp, kx, kq, kk, kv = jax.random.split(key, 5)
    params = init_params(kp, d_model, n_heads)

    # Self-attention (fused QKV path): flash kernel + attention-weight kernel.
    x = jax.random.normal(kx, (B, L, d_model), jnp.float32)
    out_flash, attn_none = attention_layer_forward(params, x, x, x, None,
                                                   output_attention=False)
    out_full, attn = attention_layer_forward(params, x, x, x, None,
                                             output_attention=True)

    # Cross-attention (separate projections path), flash kernel.
    queries = jax.random.normal(kq, (B, L, d_model), jnp.float32)
    keys_in = jax.random.normal(kk, (B, S, d_model), jnp.float32)
    values_in = jax.random.normal(kv, (B, S, d_model), jnp.float32)
    out_cross, _ = attention_layer_forward(params, queries, keys_in, values_in,
                                           None)

    jax.block_until_ready((out_flash, out_full, attn, out_cross))

    assert out_flash.shape == (B, L, d_model)
    assert out_full.shape == (B, L, d_model)
    assert out_cross.shape == (B, L, d_model)
    assert attn.shape == (B, n_heads, L, S)
    assert attn_none is None
    assert bool(jnp.allclose(out_flash, out_full, rtol=5e-2, atol=5e-2))
    print("KERNEL_OK")
</pallas_src>

<mosaic_0001>
module attributes {stable_mosaic.version = 11 : i64} {
  func.func @_linear_kernel(%arg0: i32, %arg1: i32, %arg2: i32, %arg3: memref<16x32xf32, #tpu.memory_space<vmem>>, %arg4: memref<32x96xf32, #tpu.memory_space<vmem>>, %arg5: memref<1x96xf32, #tpu.memory_space<vmem>>, %arg6: memref<16x96xf32, #tpu.memory_space<vmem>>, %arg7: memref<16x96xf32, #tpu.memory_space<vmem>>) attributes {dimension_semantics = [#tpu.dimension_semantics<parallel>, #tpu.dimension_semantics<parallel>, #tpu.dimension_semantics<arbitrary>], iteration_bounds = array<i64: 1, 1, 1>, scalar_prefetch = 0 : i64, scratch_operands = 1 : i64, tpu.core_type = #tpu.core_type<tc>, window_params = [{transform_indices = @transform_0, window_bounds = array<i64: 16, 32>}, {transform_indices = @transform_1, window_bounds = array<i64: 32, 96>}, {transform_indices = @transform_2, window_bounds = array<i64: 1, 96>}, {transform_indices = @transform_3, window_bounds = array<i64: 16, 96>}]} {
    %c0_i32 = arith.constant 0 : i32
    %0 = arith.cmpi eq, %arg2, %c0_i32 : i32
    %1 = arith.extui %0 : i1 to i32
    %c0_i32_0 = arith.constant 0 : i32
    %2 = arith.cmpi ne, %1, %c0_i32_0 : i32
    scf.if %2 {
      %cst_10 = arith.constant 0.000000e+00 : f32
      %12 = vector.broadcast %cst_10 : f32 to vector<16x96xf32>
      %c0_11 = arith.constant 0 : index
      %c0_12 = arith.constant 0 : index
      %13 = vector.load %arg7[%c0_11, %c0_12] : memref<16x96xf32, #tpu.memory_space<vmem>>, vector<16x96xf32>
      tpu.vector_store %arg7[%c0_11, %c0_12], %12 {strides = array<i32>} : memref<16x96xf32, #tpu.memory_space<vmem>>, vector<16x96xf32>,
    } else {
    }
    %c0 = arith.constant 0 : index
    %c0_1 = arith.constant 0 : index
    %3 = vector.load %arg7[%c0, %c0_1] : memref<16x96xf32, #tpu.memory_space<vmem>>, vector<16x96xf32>
    %c0_2 = arith.constant 0 : index
    %c0_3 = arith.constant 0 : index
    %4 = vector.load %arg3[%c0_2, %c0_3] : memref<16x32xf32, #tpu.memory_space<vmem>>, vector<16x32xf32>
    %c0_4 = arith.constant 0 : index
    %c0_5 = arith.constant 0 : index
    %5 = vector.load %arg4[%c0_4, %c0_5] : memref<32x96xf32, #tpu.memory_space<vmem>>, vector<32x96xf32>
    %cst = arith.constant dense<0.000000e+00> : vector<16x96xf32>
    %6 = tpu.matmul %4, %5, %cst {dimension_numbers = #tpu.dot_dimension_numbers<[1], [0], [0], [1], [0, 0, 1, 1], [], []>} : vector<16x32xf32>, vector<32x96xf32>, vector<16x96xf32> -> vector<16x96xf32>
    %7 = arith.addf %3, %6 : vector<16x96xf32>
    %c0_6 = arith.constant 0 : index
    %c0_7 = arith.constant 0 : index
    %8 = vector.load %arg7[%c0_6, %c0_7] : memref<16x96xf32, #tpu.memory_space<vmem>>, vector<16x96xf32>
    tpu.vector_store %arg7[%c0_6, %c0_7], %7 {strides = array<i32>} : memref<16x96xf32, #tpu.memory_space<vmem>>, vector<16x96xf32>,
    %c0_i32_8 = arith.constant 0 : i32
    %9 = arith.cmpi eq, %arg2, %c0_i32_8 : i32
    %10 = arith.extui %9 : i1 to i32
    %c0_i32_9 = arith.constant 0 : i32
    %11 = arith.cmpi ne, %10, %c0_i32_9 : i32
    scf.if %11 {
      %c0_10 = arith.constant 0 : index
      %c0_11 = arith.constant 0 : index
      %12 = vector.load %arg7[%c0_10, %c0_11] : memref<16x96xf32, #tpu.memory_space<vmem>>, vector<16x96xf32>
      %c0_12 = arith.constant 0 : index
      %c0_13 = arith.constant 0 : index
      %13 = vector.load %arg5[%c0_12, %c0_13] : memref<1x96xf32, #tpu.memory_space<vmem>>, vector<1x96xf32>
      %14 = vector.broadcast %13 : vector<1x96xf32> to vector<16x96xf32>
      %15 = arith.addf %12, %14 : vector<16x96xf32>
      %c0_14 = arith.constant 0 : index
      %c0_15 = arith.constant 0 : index
      %16 = vector.load %arg6[%c0_14, %c0_15] : memref<16x96xf32, #tpu.memory_space<vmem>>, vector<16x96xf32>
      tpu.vector_store %arg6[%c0_14, %c0_15], %15 {strides = array<i32>} : memref<16x96xf32, #tpu.memory_space<vmem>>, vector<16x96xf32>,
    } else {
    }
    return
  }
  func.func @transform_0(%arg0: i32, %arg1: i32, %arg2: i32) -> (i32, i32) {
    %c0_i32 = arith.constant 0 : i32
    return %arg0, %arg2 : i32, i32
  }
  func.func @transform_1(%arg0: i32, %arg1: i32, %arg2: i32) -> (i32, i32) {
    %c0_i32 = arith.constant 0 : i32
    return %arg2, %arg1 : i32, i32
  }
  func.func @transform_2(%arg0: i32, %arg1: i32, %arg2: i32) -> (i32, i32) {
    %c0_i32 = arith.constant 0 : i32
    %c0_i32_0 = arith.constant 0 : i32
    return %c0_i32, %arg1 : i32, i32
  }
  func.func @transform_3(%arg0: i32, %arg1: i32, %arg2: i32) -> (i32, i32) {
    %c0_i32 = arith.constant 0 : i32
    return %arg0, %arg1 : i32, i32
  }
}

</mosaic_0001>

<bundles_post_ra>
// kernel: tpu_custom_call.1
= control target key start
LH: loop header
LB: loop body
LE: loop exit
PB: predicated region body
PF: predicated region fallthrough
CT: control target
= control target key end

     0   :  { %8 = vsyncpa [#allocation4], 0  ;;  %s274_s0 = inlined_call_operand.hbm [shape: f32[16,32], index: 0, kind: input, shape index: {}]   ;;  %s275_s1 = inlined_call_operand.hbm [shape: f32[32,96], index: 1, kind: input, shape index: {}]   ;;  %s276_s2 = inlined_call_operand.vmem [shape: f32[1,96], index: 2, kind: input, shape index: {}]   ;;  %s277_s3 = inlined_call_operand.hbm [shape: f32[16,96], index: 3, kind: output, shape index: {}]  }
   0x1   :  { %9 = vsyncpa [#allocation7], 0 }
   0x2   :  { %10 = vsyncpa [#allocation5], 0  ;;  %s15_s14 = sshll.u32 %s274_s0, 4  ;;  %s221_s15 = smov [#allocation3]   ;;  %s16_s14 = int_to_ptr.hbm [resolvable:$true] %s15_s14 }
   0x3   :  { %s17_s16 = sshll.u32 %s221_s15, 4  ;;  %s28_s19 = sshll.u32 %s275_s1, 4  ;;  %s18_s16 = int_to_ptr.vmem [resolvable:$true] %s17_s16  ;;  %s29_s19 = int_to_ptr.hbm [resolvable:$true] %s28_s19 }
   0x4   :  { %s222_s20 = smov 128   ;;  %s223_s21 = smov 8  }
   0x5   :  { %23 = dma.hbm_to_vmem [thread:$0]  %s16_s14, 256, %s18_s16, [#allocation4], %s222_s20, %s222_s20, %s223_s21  }
   0x6   :  { %s224_s22 = smov [#allocation6]  }
   0x7   :  { %s30_s23 = sshll.u32 %s224_s22, 4  ;;  %s31_s23 = int_to_ptr.vmem [resolvable:$true] %s30_s23 }
   0x8   :  { %36 = dma.hbm_to_vmem [thread:$0]  %s29_s19, 512, %s31_s23, [#allocation7], %s222_s20, %s222_s20, %s223_s21  }
   0x9   :  { %215 = dma.done.wait [#allocation4], 256  }
   0xa   :  { %216 = vsyncadd [#allocation4], 4294967040 }
   0xb   :  { %217 = dma.done.wait [#allocation7], 512  }
   0xc   :  { %218 = vsyncadd [#allocation7], 4294966784  ;;  %vm51_vm0 = vcmask 785408   ;;  %v225_v0 = vmov 0.0   ;;  %v61_v1 = vld [vmem:[#allocation6 + $0x18] sm:$0xff]  ;;  %v60_v2 = vld [vmem:[#allocation6 + $0x10] sm:$0xff] }
   0xd   :  { %52 = vst.msk [vmem:[#allocation2] sm:$0xff] %vm51_vm0, %v225_v0  ;;  %81 = vmatpush.msra.mxu0 %v61_v1  ;;  %132 = vmatpush.msra.mxu1 %v61_v1  ;;  %v59_v3 = vld [vmem:[#allocation6 + $0x8] sm:$0xff]  ;;  %v58_v4 = vld [vmem:[#allocation6] sm:$0xff]  ;;  %v56_v5 = vld [vmem:[#allocation3] sm:$0xff]  ;;  %vm62_vm1 = vcmask 261120   ;;  %s226_s24 = smov [#allocation8]  }
   0xe   :  { %53 = vst.msk [vmem:[#allocation2 + $0x8] sm:$0xff] %vm51_vm0, %v225_v0  ;;  %v57_v6 = vld [vmem:[#allocation3 + $0x8] sm:$0xff]  ;;  %v142_v13 = vld [vmem:[%s276_s2] ss:$0 sm:$0xff]  ;;  %s114_s25 = sshll.u32 %s226_s24, 4  ;;  %s116_s28 = sshll.u32 %s277_s3, 4  ;;  %s115_s25 = int_to_ptr.vmem [resolvable:$true] %s114_s25  ;;  %s117_s28 = int_to_ptr.hbm [resolvable:$true] %s116_s28 }
   0xf   :  { %82 = vmatpush.msra.mxu0 %v60_v2  ;;  %133 = vmatpush.msra.mxu1 %v60_v2 }
  0x11   :  { %83 = vmatpush.msra.mxu0 %v59_v3  ;;  %134 = vmatpush.msra.mxu1 %v59_v3 }
  0x13   :  { %84 = vmatpush.msra.mxu0 %v58_v4  ;;  %135 = vmatpush.msra.mxu1 %v58_v4 }
  0x14   :  { %130 = vmatmul.msk.f32.vlgmr.msra.gmra.mxu0 %vm62_vm1, %v56_v5  ;;  %131 = vmatmul.msk.f32.vlgmr.msra.gmra.mxu1 %vm62_vm1, %v57_v6  ;;  %v54_v7 = vld [vmem:[#allocation2] sm:$0xff] }
  0x15   :  { %v55_v8 = vld [vmem:[#allocation2 + $0x8] sm:$0xff] }
  0x91   :  { %v86_v9 = vpop.f32.mrf.mxu0  ;;  %v89_v10 = vpop.f32.mrf.mxu1 }
  0x92   :  { %v92_v11 = vadd.f32 %v86_v9, %v54_v7  ;;  %v93_v12 = vadd.f32 %v89_v10, %v55_v8 }
  0x94   :  { %95 = vst.msk [vmem:[#allocation2] sm:$0xff] %vm51_vm0, %v92_v11 }
  0x95   :  { %96 = vst.msk [vmem:[#allocation2 + $0x8] sm:$0xff] %vm51_vm0, %v93_v12 }
  0x9b   :  { %v100_v14 = vld [vmem:[#allocation2] sm:$0xff] }
  0x9c   :  { %v101_v15 = vld [vmem:[#allocation2 + $0x8] sm:$0xff]  ;;  %v106_v16 = vadd.f32 %v142_v13, %v100_v14 }
  0x9d   :  { %v107_v17 = vadd.f32 %v142_v13, %v101_v15 }
  0x9e   :  { %108 = vst.msk [vmem:[#allocation8] sm:$0xff] %vm51_vm0, %v106_v16 }
  0x9f   :  { %109 = vst.msk [vmem:[#allocation8 + $0x8] sm:$0xff] %vm51_vm0, %v107_v17 }
  0xa0   :  { %122 = dma.vmem_to_hbm [thread:$0]  %s115_s25, 256, %s117_s28, [#allocation5], %s222_s20, %s222_s20, %s223_s21  }
  0xa1   :  { %219 = dma.done.wait [#allocation5], 256  }
  0xa2   :  { %220 = vsyncadd [#allocation5], 4294967040 }
  0xa3   :  { %127 = vsyncpa [#allocation4], 1 }
  0xa4   :  { %128 = vsyncpa [#allocation7], 1 }
  0xa5   :  { %129 = vsyncpa [#allocation5], 1 }

</bundles_post_ra>
